<compile_context>
chip_gen: v7x
topology: tpu7x:2x2x1
jax: 0.10.0
libtpu: 0.0.40
codegen_flags: <defaults>
</compile_context>

<pallas_src>
import jax
import jax.numpy as jnp
from jax.experimental import pallas as pl
from jax.experimental.pallas import tpu as pltpu


# ~4 MiB per tile. Double-buffered input + output => ~16 MiB live VMEM plus
# headroom: fine on v5e/v6e (128 MiB physical) and well under the ~48 MiB/TC
# budget that keeps both v7x TensorCores double-buffered (64 MiB physical).
_TARGET_TILE_BYTES = 4 << 20

# Lane-dense last dims (multiples of 128 -> unmasked full-width stores and
# long contiguous DMA descriptors). Widest first.
_LANE_CANDIDATES = (32768, 16384, 8192, 4096, 2048, 1024, 512, 256, 128)

# Arrays above this size get a multi-step grid so DMAs overlap (pipelining)
# and the "parallel" row axis can be split across v7x's two TensorCores.
_MIN_PIPELINE_BYTES = 1 << 20
_MIN_PIPELINE_STEPS = 4


def _predict_tile_kernel(x_ref, o_ref):
    # TODO(synk): Predictor.predict is an @abstractmethod with no concrete
    # computation in the reference module, so the per-tile `predict` is the
    # identity here (swap in the real body when a concrete Predictor exists).
    o_ref[...] = x_ref[...]


def _dma_copy_kernel(x_hbm, o_hbm, sem):
    # Whole-array HBM->HBM DMA: no VMEM staging, no pad/slice passes, no
    # (8,128) block constraints -- used for ragged (non-128-multiple) sizes.
    cp = pltpu.make_async_copy(x_hbm, o_hbm, sem)
    cp.start()
    cp.wait()


def _sublane_multiple(itemsize: int) -> int:
    # Sub-32-bit dtypes pack along sublanes: 8 rows for 4-byte, 16 for 2-byte,
    # 32 for 1-byte keeps stores unmasked and avoids packed-layout relayouts.
    return max(8, 32 // itemsize)


def _choose_block_rows(rows: int, lane: int, itemsize: int) -> int:
    m = _sublane_multiple(itemsize)

    # Largest row count that keeps one tile around _TARGET_TILE_BYTES.
    tile_rows = max(m, _TARGET_TILE_BYTES // (lane * itemsize))
    tile_rows -= tile_rows % m

    # Enforce a minimum number of grid steps for large arrays so the pipeline
    # actually overlaps read/write and both v7x cores get blocks.
    total_bytes = rows * lane * itemsize
    min_steps = _MIN_PIPELINE_STEPS if total_bytes > _MIN_PIPELINE_BYTES else 1
    cap = -(-rows // min_steps)          # ceil(rows / min_steps)
    cap -= cap % m
    cap = max(m, cap)

    block_rows = max(m, min(tile_rows, cap))
    if block_rows >= rows:
        return rows                      # single full-extent block (always legal)
    return block_rows


def _tiled_identity_predict(x2, block_rows: int, donate_input: bool):
    rows, lane = x2.shape
    itemsize = jnp.dtype(x2.dtype).itemsize
    block_bytes = block_rows * lane * itemsize
    # Scoped-VMEM limit derived from the real buffers (2 in + 2 out double
    # buffers) plus headroom, clamped to a range safe on v5e/v6e/v7x.
    vmem_limit = int(min(max(4 * block_bytes + (8 << 20), 16 << 20), 48 << 20))

    return pl.pallas_call(
        _predict_tile_kernel,
        out_shape=jax.ShapeDtypeStruct(x2.shape, x2.dtype),
        grid_spec=pltpu.PrefetchScalarGridSpec(
            num_scalar_prefetch=0,
            grid=(pl.cdiv(rows, block_rows),),
            in_specs=[pl.BlockSpec((block_rows, lane), lambda i: (i, 0))],
            out_specs=pl.BlockSpec((block_rows, lane), lambda i: (i, 0)),
        ),
        compiler_params=pltpu.CompilerParams(
            # Row axis is independent -> the two v7x TensorCores split it.
            dimension_semantics=("parallel",),
            vmem_limit_bytes=vmem_limit,
        ),
        # Optional HBM-buffer donation (output aliases the selected input).
        input_output_aliases=({0: 0} if donate_input else {}),
    )(x2)


def _dma_identity_predict(x):
    return pl.pallas_call(
        _dma_copy_kernel,
        out_shape=jax.ShapeDtypeStruct(x.shape, x.dtype),
        in_specs=[pl.BlockSpec(memory_space=pl.ANY)],
        out_specs=pl.BlockSpec(memory_space=pl.ANY),
        scratch_shapes=[pltpu.SemaphoreType.DMA(())],
    )(x)


def predictor_forward(inputs, naive_inputs, new_prediction: bool = False,
                      skip_identity_copy: bool = False,
                      donate_input: bool = False):
    """JAX/Pallas equivalent of Predictor(New_prediction=...).forward(...).

    `donate_input=True` aliases the output onto the selected input buffer;
    standard donation hazard if the caller reuses that array afterwards.
    """
    assert inputs.shape == naive_inputs.shape
    assert inputs.dtype == naive_inputs.dtype

    # Static selection: the untaken tensor is never read (no HBM traffic,
    # no per-element select on the VPU).
    selected = inputs if new_prediction else naive_inputs

    # With the placeholder identity `predict`, the Pallas copy is pure HBM
    # traffic -- callers that only need the value can skip it entirely.
    if skip_identity_copy or selected.size == 0:
        return selected

    total = selected.size
    itemsize = jnp.dtype(selected.dtype).itemsize

    # Lane-dense 2-D view: widest last dim (multiple of 128) that divides the
    # element count -> unmasked stores, long DMA descriptors.
    lane = next((c for c in _LANE_CANDIDATES if total % c == 0), None)

    if lane is None:
        # Element count not a multiple of 128: no pad + post-slice (each would
        # be a whole extra HBM pass). Stream the array HBM->HBM with one DMA.
        return _dma_identity_predict(selected)

    rows = total // lane
    x2 = selected.reshape(rows, lane)
    block_rows = _choose_block_rows(rows, lane, itemsize)
    out2 = _tiled_identity_predict(x2, block_rows, donate_input)
    return out2.reshape(selected.shape)


if __name__ == "__main__":
    key = jax.random.PRNGKey(0)
    k1, k2, k3, k4 = jax.random.split(key, 4)

    # Small NCHW image-like inputs (element count is a multiple of 128 ->
    # lane-dense tiled-copy path).
    inputs = jax.random.normal(k1, (2, 4, 16, 16), dtype=jnp.float32)
    naive_inputs = jax.random.normal(k2, (2, 4, 16, 16), dtype=jnp.float32)

    # New_prediction=False (module default) -> predict(naive_inputs).
    out_default = jax.block_until_ready(
        predictor_forward(inputs, naive_inputs, new_prediction=False))
    # New_prediction=True -> predict(inputs).
    out_new = jax.block_until_ready(
        predictor_forward(inputs, naive_inputs, new_prediction=True))

    assert out_default.shape == (2, 4, 16, 16)
    assert out_new.shape == (2, 4, 16, 16)
    assert jnp.allclose(out_default, naive_inputs)
    assert jnp.allclose(out_new, inputs)

    # Ragged element count (105, not a multiple of 128) -> HBM->HBM DMA path
    # (replaces the old pad + slice fallback: no extra HBM passes).
    odd_a = jax.random.normal(k3, (3, 5, 7), dtype=jnp.float32)
    odd_b = jax.random.normal(k4, (3, 5, 7), dtype=jnp.float32)
    out_odd = jax.block_until_ready(
        predictor_forward(odd_a, odd_b, new_prediction=True))
    assert out_odd.shape == (3, 5, 7)
    assert jnp.allclose(out_odd, odd_a)

    # Identity short-circuit (no HBM traffic at all).
    out_skip = predictor_forward(inputs, naive_inputs, new_prediction=False,
                                 skip_identity_copy=True)
    assert jnp.allclose(out_skip, naive_inputs)

    print("KERNEL_OK")
</pallas_src>

<mosaic_0001>
module attributes {stable_mosaic.version = 11 : i64} {
  func.func @_predict_tile_kernel(%arg0: i32, %arg1: memref<1x2048xf32, #tpu.memory_space<vmem>>, %arg2: memref<1x2048xf32, #tpu.memory_space<vmem>>) attributes {dimension_semantics = [#tpu.dimension_semantics<parallel>], iteration_bounds = array<i64: 1>, scalar_prefetch = 0 : i64, scratch_operands = 0 : i64, tpu.core_type = #tpu.core_type<tc>, window_params = [{transform_indices = @transform_0, window_bounds = array<i64: 1, 2048>}, {transform_indices = @transform_1, window_bounds = array<i64: 1, 2048>}]} {
    %c0 = arith.constant 0 : index
    %c0_0 = arith.constant 0 : index
    %0 = vector.load %arg1[%c0, %c0_0] : memref<1x2048xf32, #tpu.memory_space<vmem>>, vector<1x2048xf32>
    %c0_1 = arith.constant 0 : index
    %c0_2 = arith.constant 0 : index
    %1 = vector.load %arg2[%c0_1, %c0_2] : memref<1x2048xf32, #tpu.memory_space<vmem>>, vector<1x2048xf32>
    tpu.vector_store %arg2[%c0_1, %c0_2], %0 {strides = array<i32>} : memref<1x2048xf32, #tpu.memory_space<vmem>>, vector<1x2048xf32>,
    return
  }
  func.func @transform_0(%arg0: i32) -> (i32, i32) {
    %c0_i32 = arith.constant 0 : i32
    %c0_i32_0 = arith.constant 0 : i32
    return %arg0, %c0_i32 : i32, i32
  }
  func.func @transform_1(%arg0: i32) -> (i32, i32) {
    %c0_i32 = arith.constant 0 : i32
    %c0_i32_0 = arith.constant 0 : i32
    return %arg0, %c0_i32 : i32, i32
  }
}

</mosaic_0001>

<bundles_post_ra>
// kernel: tpu_custom_call.1
= control target key start
LH: loop header
LB: loop body
LE: loop exit
PB: predicated region body
PF: predicated region fallthrough
CT: control target
= control target key end

     0   :  { %6 = vsyncpa [#allocation3], 0  ;;  %s126_s0 = inlined_call_operand.hbm [shape: f32[1,2048], index: 0, kind: input, shape index: {}]   ;;  %s127_s1 = inlined_call_operand.hbm [shape: f32[1,2048], index: 1, kind: output, shape index: {}]  }
   0x1   :  { %7 = vsyncpa [#allocation4], 0  ;;  %s90_s6 = smov [#allocation2]   ;;  %s42_s10 = scalar_lea.hbm %s126_s0, 256 }
   0x2   :  { %s14_s7 = sshll.u32 %s90_s6, 4  ;;  %p43_p0 = scmp.ne.s32.totalorder %s126_s0, %s42_s10  ;;  %s15_s7 = int_to_ptr.vmem [resolvable:$true] %s14_s7 }
   0x3   :  { %p46_p1 = scmp.lt.u32.totalorder %s42_s10, %s126_s0 }
   0x5   :  { %p48_p2 = pnand %p46_p1, %p43_p0 }
   0x7   :  { %51 = shalt.err (!%p48_p2)
}
   0x8   :  { %s52_s15 = scalar_lea.vmem %s15_s7, 256  ;;  %p57_p4 = scmp.lt.s32.totalorder %s15_s7, %s15_s7 }
   0x9   :  { %p53_p3 = scmp.ne.s32.totalorder %s15_s7, %s52_s15  ;;  %p58_p5 = scmp.lt.s32.totalorder %s52_s15, %s52_s15 }
   0xb   :  { %p59_p6 = por %p58_p5, %p57_p4 }
   0xd   :  { %p60_p7 = pnand %p59_p6, %p53_p3 }
   0xf   :  { %63 = shalt.err (!%p60_p7)
}
  0x10   :  { %17 = dma.hbm_to_vmem [thread:$0]  %s126_s0, 256, %s15_s7, [#allocation3]  }
  0x11   :  { %86 = dma.done.wait [#allocation3], 256  }
  0x12   :  { %87 = vsyncadd [#allocation3], 4294967040  ;;  %s91_s18 = smov [#allocation5]   ;;  %v21_v0 = vld [vmem:[#allocation2] sm:$0xff]  ;;  %v22_v1 = vld [vmem:[#allocation2 + $0x8] sm:$0xff] }
  0x13   :  { %s31_s19 = sshll.u32 %s91_s18, 4  ;;  %23 = vst [vmem:[#allocation5] sm:$0xff] %v21_v0  ;;  %24 = vst [vmem:[#allocation5 + $0x8] sm:$0xff] %v22_v1  ;;  %s32_s19 = int_to_ptr.vmem [resolvable:$true] %s31_s19 }
  0x14   :  { %s64_s20 = scalar_lea.vmem %s32_s19, 256  ;;  %p69_p9 = scmp.lt.s32.totalorder %s32_s19, %s32_s19 }
  0x15   :  { %p65_p8 = scmp.ne.s32.totalorder %s32_s19, %s64_s20  ;;  %p70_p10 = scmp.lt.s32.totalorder %s64_s20, %s64_s20 }
  0x17   :  { %p71_p11 = por %p70_p10, %p69_p9 }
  0x19   :  { %p72_p12 = pnand %p71_p11, %p65_p8 }
  0x1b   :  { %75 = shalt.err (!%p72_p12)
}
  0x1c   :  { %s76_s0 = scalar_lea.hbm %s127_s1, 256 }
  0x1d   :  { %p77_p13 = scmp.ne.s32.totalorder %s127_s1, %s76_s0  ;;  %p80_p0 = scmp.lt.u32.totalorder %s76_s0, %s127_s1 }
  0x1f   :  { %p82_p1 = pnand %p80_p0, %p77_p13 }
  0x21   :  { %85 = shalt.err (!%p82_p1)
}
  0x22   :  { %34 = dma.vmem_to_hbm [thread:$0]  %s32_s19, 256, %s127_s1, [#allocation4]  }
  0x23   :  { %88 = dma.done.wait [#allocation4], 256  }
  0x24   :  { %89 = vsyncadd [#allocation4], 4294967040 }
  0x25   :  { %38 = vsyncpa [#allocation3], 1 }
  0x26   :  { %39 = vsyncpa [#allocation4], 1 }

</bundles_post_ra>
